<compile_context>
chip_gen: v6e
topology: v6e:2x2x1
jax: 0.10.0
libtpu: 0.0.40
codegen_flags: <defaults>
</compile_context>

<pallas_src>
import jax
import jax.numpy as jnp
from jax.experimental import pallas as pl
from jax.experimental.pallas import tpu as pltpu


def _pick_tile(dim, preferred):
    """Largest multiple of 128 that divides `dim` and is <= preferred, else dim."""
    best = None
    t = 128
    while t <= min(dim, preferred):
        if dim % t == 0:
            best = t
        t += 128
    # TODO(synk): no padding/ragged path; falls back to a single full-size block.
    return best if best is not None else dim


# ----------------------------------------------------------------------------
# Kernel 1: fused prediction + target MLPs (stacks of 1x1 convs == matmuls),
# channels-first: h_{l+1} = W_l^T @ h_l + b_l, ReLU on all but the last layer.
# ----------------------------------------------------------------------------
def _fused_mlp_kernel(x_ref, pw_ref, pb_ref, tw_ref, tb_ref, p_out_ref, t_out_ref):
    # x_ref: (C, TN); *w_ref: (L, C, C); *b_ref: (L, C, 1); outs: (C, TN)
    x = x_ref[...]
    n_layers = pw_ref.shape[0]

    def run_stack(w_ref, b_ref):
        h = x
        for l in range(n_layers):
            # channels-first equivalent of (h_cl @ W_l + b_l):  W_l^T @ h + b_l
            h = jax.lax.dot_general(
                w_ref[l], h,
                dimension_numbers=(((0,), (0,)), ((), ())),
                preferred_element_type=jnp.float32) + b_ref[l]
            if l < n_layers - 1:
                h = jnp.maximum(h, 0.0)
        return h

    p_out_ref[...] = run_stack(pw_ref, pb_ref).astype(p_out_ref.dtype)
    t_out_ref[...] = run_stack(tw_ref, tb_ref).astype(t_out_ref.dtype)


def fused_mlp_apply(x_cf, pred_w, pred_b, tgt_w, tgt_b, *, tile_n=2048):
    """x_cf: (C, N).  Returns (preds, targets), both (C, N) f32."""
    C, N = x_cf.shape
    L = pred_w.shape[0]
    TN = _pick_tile(N, tile_n)
    assert N % TN == 0

    const3 = lambda i: (0, 0, 0)
    return pl.pallas_call(
        _fused_mlp_kernel,
        out_shape=(jax.ShapeDtypeStruct((C, N), jnp.float32),
                   jax.ShapeDtypeStruct((C, N), jnp.float32)),
        grid_spec=pltpu.PrefetchScalarGridSpec(
            num_scalar_prefetch=0,
            grid=(N // TN,),
            in_specs=[
                pl.BlockSpec((C, TN), lambda i: (0, i)),
                pl.BlockSpec((L, C, C), const3),
                pl.BlockSpec((L, C, 1), const3),
                pl.BlockSpec((L, C, C), const3),
                pl.BlockSpec((L, C, 1), const3),
            ],
            out_specs=(pl.BlockSpec((C, TN), lambda i: (0, i)),
                       pl.BlockSpec((C, TN), lambda i: (0, i))),
        ),
        compiler_params=pltpu.CompilerParams(
            dimension_semantics=("parallel",)),
    )(x_cf, pred_w, pred_b, tgt_w, tgt_b)


# ----------------------------------------------------------------------------
# Kernel 2: tiled online-softmax cross-entropy.
#   logits_tile = preds_tile^T @ targets_tile   (TN, TM), never full (n, m)
#   label logit handled structurally via the pre-aligned positive targets.
# Per n-tile partial:  sum_rows(lse) - sum(preds_tile * pos_tile)
# ----------------------------------------------------------------------------
def _cpc_ce_kernel(p_ref, t_ref, pos_ref, out_ref, m_sc, l_sc):
    # p_ref/pos_ref: (C, TN), t_ref: (C, TM), out_ref: (1, 128)
    # m_sc, l_sc: (TN, 1) f32 scratch (running max / running sum-exp)
    mj = pl.program_id(1)
    p = p_ref[...]

    @pl.when(mj == 0)
    def _():
        m_sc[...] = jnp.full(m_sc.shape, -jnp.inf, dtype=m_sc.dtype)
        l_sc[...] = jnp.zeros(l_sc.shape, dtype=l_sc.dtype)

    logits = jax.lax.dot_general(
        p, t_ref[...],
        dimension_numbers=(((0,), (0,)), ((), ())),
        preferred_element_type=jnp.float32)                       # (TN, TM)

    m_new = jnp.maximum(m_sc[...], jnp.max(logits, axis=-1, keepdims=True))
    l_sc[...] = (l_sc[...] * jnp.exp(m_sc[...] - m_new)
                 + jnp.sum(jnp.exp(logits - m_new), axis=-1, keepdims=True))
    m_sc[...] = m_new

    @pl.when(mj == pl.num_programs(1) - 1)
    def _():
        lse = m_sc[...] + jnp.log(l_sc[...])                       # (TN, 1)
        lab = jnp.sum(p * pos_ref[...])                            # scalar
        val = jnp.sum(lse) - lab
        out_ref[...] = jnp.broadcast_to(val, out_ref.shape).astype(out_ref.dtype)


def cpc_cross_entropy_cf(preds_i, targets, pos_targets, *, tn_pref=512, tm_pref=1024):
    """preds_i/pos_targets: (C, n) (preds already scaled); targets: (C, m).

    Returns mean cross-entropy over the n rows.
    """
    C, n = preds_i.shape
    _, m = targets.shape
    TN = _pick_tile(n, tn_pref)
    TM = _pick_tile(m, tm_pref)
    n_tiles = n // TN
    m_tiles = m // TM

    out = pl.pallas_call(
        _cpc_ce_kernel,
        out_shape=jax.ShapeDtypeStruct((1, 128 * n_tiles), jnp.float32),
        grid_spec=pltpu.PrefetchScalarGridSpec(
            num_scalar_prefetch=0,
            grid=(n_tiles, m_tiles),
            in_specs=[
                pl.BlockSpec((C, TN), lambda i, j: (0, i)),
                pl.BlockSpec((C, TM), lambda i, j: (0, j)),
                pl.BlockSpec((C, TN), lambda i, j: (0, i)),
            ],
            out_specs=pl.BlockSpec((1, 128), lambda i, j: (0, i)),
            scratch_shapes=[pltpu.VMEM((TN, 1), jnp.float32),
                            pltpu.VMEM((TN, 1), jnp.float32)],
        ),
        compiler_params=pltpu.CompilerParams(
            dimension_semantics=("parallel", "arbitrary")),
    )(preds_i, targets, pos_targets)

    partials = out.reshape(n_tiles, 128)[:, 0]
    return jnp.sum(partials) / n


# ----------------------------------------------------------------------------
# CPCLoss wrapper
# ----------------------------------------------------------------------------
class CPCLossPallas:
    """Pallas port of lisl.losses.cpc_loss.CPCLoss (forward only).

    MLP(in, out, n_hidden_layers, n_hidden, ndim=2) is realized as
    (encoder_layers) hidden 1x1 convs + ReLU, then a final 1x1 projection.
    Here in == n_hidden == out == hidden_channels, so all weights are (C, C).
    Parameters are stored in the channels-last convention (out = in @ W + b^T).
    """

    def __init__(self, hidden_channels, encoder_layers, distance, stride, key):
        self.hidden_channels = hidden_channels
        self.distance = distance
        self.stride = stride
        # `self.embed_scale` is referenced but never set in the reference
        # __init__; standard CPC implementations use 0.1.
        self.embed_scale = 0.1

        n_layers = encoder_layers + 1  # hidden convs + final projection
        C = hidden_channels
        bound = 1.0 / (C ** 0.5)       # torch conv default (kaiming-uniform fan_in)

        def init_stack(k):
            kw, kb = jax.random.split(k)
            w = jax.random.uniform(kw, (n_layers, C, C), jnp.float32, -bound, bound)
            b = jax.random.uniform(kb, (n_layers, C, 1), jnp.float32, -bound, bound)
            return w, b

        k_pred, k_tgt = jax.random.split(key)
        self.pred_w, self.pred_b = init_stack(k_pred)
        self.tgt_w, self.tgt_b = init_stack(k_tgt)

    def __call__(self, embedding):
        # embedding: (b, c, h, w)  NCHW, as in PyTorch
        if self.stride > 1:
            # TODO(synk): reference uses random.randint(0, stride) shifts; a
            # deterministic shift of 0 is used here instead of Python RNG.
            embedding = embedding[..., ::self.stride, ::self.stride]
        b, c, h, w = embedding.shape
        d = self.distance
        assert h > d + 1, "distance too large for the spatial extent"
        N = b * h * w

        # channels-first flatten: (c, b*h*w).  Cheap (b,c) swap of contiguous
        # h*w chunks; no NHWC transpose anywhere.
        x_cf = jnp.transpose(embedding.reshape(b, c, h * w), (1, 0, 2)).reshape(c, N)

        # fold embed_scale into the final (linear) prediction layer
        pw = self.pred_w.at[-1].multiply(self.embed_scale)
        pb = self.pred_b.at[-1].multiply(self.embed_scale)

        preds_s, targets = fused_mlp_apply(x_cf, pw, pb, self.tgt_w, self.tgt_b)

        col_dim = h - d - 1
        n = b * col_dim * w
        # Rows actually used by the loss (first col_dim rows of h per batch),
        # and the positive targets: label = b1*h*w + (d+1)*w + c1 is just a
        # contiguous per-batch shift of the target columns -> plain slices.
        preds_i = preds_s.reshape(c, b, h * w)[:, :, :col_dim * w].reshape(c, n)
        pos_tgt = targets.reshape(c, b, h * w)[:, :, (d + 1) * w:].reshape(c, n)

        return cpc_cross_entropy_cf(preds_i, targets, pos_tgt)


# ----------------------------------------------------------------------------
# Pure-JAX reference (channels-last, full logits) for correctness verification
# ----------------------------------------------------------------------------
def _reference_loss(module, embedding):
    if module.stride > 1:
        embedding = embedding[..., ::module.stride, ::module.stride]
    b, c, h, w = embedding.shape
    x = jnp.transpose(embedding, (0, 2, 3, 1)).reshape(-1, c)

    def mlp(xv, W, B):
        hcur = xv
        L = W.shape[0]
        for l in range(L):
            hcur = hcur @ W[l] + B[l].T
            if l < L - 1:
                hcur = jnp.maximum(hcur, 0.0)
        return hcur

    preds = mlp(x, module.pred_w, module.pred_b)
    targets = mlp(x, module.tgt_w, module.tgt_b)
    d = module.distance
    col_dim = h - d - 1
    preds_i = (preds.reshape(b, h, w, c)[:, :col_dim] * module.embed_scale).reshape(-1, c)
    logits = preds_i @ targets.T
    n = b * col_dim * w
    idx = jnp.arange(n)
    labels = (idx // (col_dim * w)) * h * w + (d + 1) * w + (idx % (col_dim * w))
    logp = jax.nn.log_softmax(logits, axis=-1)
    return -jnp.mean(jnp.take_along_axis(logp, labels[:, None], axis=-1))


if __name__ == "__main__":
    key = jax.random.PRNGKey(0)
    k_param, k_data = jax.random.split(key)

    batch, hidden_channels, H, W = 2, 32, 16, 16
    encoder_layers, distance, stride = 2, 2, 1

    module = CPCLossPallas(hidden_channels, encoder_layers, distance, stride, k_param)
    embedding = jax.random.normal(k_data, (batch, hidden_channels, H, W), jnp.float32)

    loss = jax.block_until_ready(module(embedding))
    ref = jax.block_until_ready(_reference_loss(module, embedding))

    assert jnp.isfinite(loss), "non-finite loss"
    assert jnp.allclose(loss, ref, rtol=1e-4, atol=1e-3), (loss, ref)
    print("KERNEL_OK")
</pallas_src>

<mosaic_0001>
module attributes {stable_mosaic.version = 11 : i64} {
  func.func @_fused_mlp_kernel(%arg0: i32, %arg1: memref<32x512xf32, #tpu.memory_space<vmem>>, %arg2: memref<3x32x32xf32, #tpu.memory_space<vmem>>, %arg3: memref<3x32x1xf32, #tpu.memory_space<vmem>>, %arg4: memref<3x32x32xf32, #tpu.memory_space<vmem>>, %arg5: memref<3x32x1xf32, #tpu.memory_space<vmem>>, %arg6: memref<32x512xf32, #tpu.memory_space<vmem>>, %arg7: memref<32x512xf32, #tpu.memory_space<vmem>>) attributes {dimension_semantics = [#tpu.dimension_semantics<parallel>], iteration_bounds = array<i64: 1>, scalar_prefetch = 0 : i64, scratch_operands = 0 : i64, tpu.core_type = #tpu.core_type<tc>, window_params = [{transform_indices = @transform_0, window_bounds = array<i64: 32, 512>}, {pipeline_mode = #tpu.pipeline_mode<synchronous>, transform_indices = @transform_1, window_bounds = array<i64: 3, 32, 32>}, {pipeline_mode = #tpu.pipeline_mode<synchronous>, transform_indices = @transform_2, window_bounds = array<i64: 3, 32, 1>}, {pipeline_mode = #tpu.pipeline_mode<synchronous>, transform_indices = @transform_3, window_bounds = array<i64: 3, 32, 32>}, {pipeline_mode = #tpu.pipeline_mode<synchronous>, transform_indices = @transform_4, window_bounds = array<i64: 3, 32, 1>}, {transform_indices = @transform_5, window_bounds = array<i64: 32, 512>}, {transform_indices = @transform_6, window_bounds = array<i64: 32, 512>}]} {
    %c0 = arith.constant 0 : index
    %c0_0 = arith.constant 0 : index
    %0 = vector.load %arg1[%c0, %c0_0] : memref<32x512xf32, #tpu.memory_space<vmem>>, vector<32x512xf32>
    %c0_1 = arith.constant 0 : index
    %c0_2 = arith.constant 0 : index
    %c0_3 = arith.constant 0 : index
    %1 = vector.load %arg2[%c0_1, %c0_2, %c0_3] : memref<3x32x32xf32, #tpu.memory_space<vmem>>, vector<1x32x32xf32>
    %2 = vector.shape_cast %1 : vector<1x32x32xf32> to vector<32x32xf32>
    %cst = arith.constant dense<0.000000e+00> : vector<32x512xf32>
    %3 = tpu.matmul %2, %0, %cst {dimension_numbers = #tpu.dot_dimension_numbers<[0], [0], [1], [1], [0, 1, 1, 1], [], []>} : vector<32x32xf32>, vector<32x512xf32>, vector<32x512xf32> -> vector<32x512xf32>
    %c0_4 = arith.constant 0 : index
    %c0_5 = arith.constant 0 : index
    %c0_6 = arith.constant 0 : index
    %4 = vector.load %arg3[%c0_4, %c0_5, %c0_6] : memref<3x32x1xf32, #tpu.memory_space<vmem>>, vector<1x32x1xf32>
    %5 = vector.shape_cast %4 : vector<1x32x1xf32> to vector<32x1xf32>
    %6 = vector.broadcast %5 : vector<32x1xf32> to vector<32x512xf32>
    %7 = arith.addf %3, %6 : vector<32x512xf32>
    %cst_7 = arith.constant 0.000000e+00 : f32
    %8 = vector.broadcast %cst_7 : f32 to vector<32x512xf32>
    %9 = arith.maximumf %7, %8 : vector<32x512xf32>
    %c1 = arith.constant 1 : index
    %c0_8 = arith.constant 0 : index
    %c0_9 = arith.constant 0 : index
    %10 = vector.load %arg2[%c1, %c0_8, %c0_9] : memref<3x32x32xf32, #tpu.memory_space<vmem>>, vector<1x32x32xf32>
    %11 = vector.shape_cast %10 : vector<1x32x32xf32> to vector<32x32xf32>
    %cst_10 = arith.constant dense<0.000000e+00> : vector<32x512xf32>
    %12 = tpu.matmul %11, %9, %cst_10 {dimension_numbers = #tpu.dot_dimension_numbers<[0], [0], [1], [1], [0, 1, 1, 1], [], []>} : vector<32x32xf32>, vector<32x512xf32>, vector<32x512xf32> -> vector<32x512xf32>
    %c1_11 = arith.constant 1 : index
    %c0_12 = arith.constant 0 : index
    %c0_13 = arith.constant 0 : index
    %13 = vector.load %arg3[%c1_11, %c0_12, %c0_13] : memref<3x32x1xf32, #tpu.memory_space<vmem>>, vector<1x32x1xf32>
    %14 = vector.shape_cast %13 : vector<1x32x1xf32> to vector<32x1xf32>
    %15 = vector.broadcast %14 : vector<32x1xf32> to vector<32x512xf32>
    %16 = arith.addf %12, %15 : vector<32x512xf32>
    %cst_14 = arith.constant 0.000000e+00 : f32
    %17 = vector.broadcast %cst_14 : f32 to vector<32x512xf32>
    %18 = arith.maximumf %16, %17 : vector<32x512xf32>
    %c2 = arith.constant 2 : index
    %c0_15 = arith.constant 0 : index
    %c0_16 = arith.constant 0 : index
    %19 = vector.load %arg2[%c2, %c0_15, %c0_16] : memref<3x32x32xf32, #tpu.memory_space<vmem>>, vector<1x32x32xf32>
    %20 = vector.shape_cast %19 : vector<1x32x32xf32> to vector<32x32xf32>
    %cst_17 = arith.constant dense<0.000000e+00> : vector<32x512xf32>
    %21 = tpu.matmul %20, %18, %cst_17 {dimension_numbers = #tpu.dot_dimension_numbers<[0], [0], [1], [1], [0, 1, 1, 1], [], []>} : vector<32x32xf32>, vector<32x512xf32>, vector<32x512xf32> -> vector<32x512xf32>
    %c2_18 = arith.constant 2 : index
    %c0_19 = arith.constant 0 : index
    %c0_20 = arith.constant 0 : index
    %22 = vector.load %arg3[%c2_18, %c0_19, %c0_20] : memref<3x32x1xf32, #tpu.memory_space<vmem>>, vector<1x32x1xf32>
    %23 = vector.shape_cast %22 : vector<1x32x1xf32> to vector<32x1xf32>
    %24 = vector.broadcast %23 : vector<32x1xf32> to vector<32x512xf32>
    %25 = arith.addf %21, %24 : vector<32x512xf32>
    %c0_21 = arith.constant 0 : index
    %c0_22 = arith.constant 0 : index
    %26 = vector.load %arg6[%c0_21, %c0_22] : memref<32x512xf32, #tpu.memory_space<vmem>>, vector<32x512xf32>
    tpu.vector_store %arg6[%c0_21, %c0_22], %25 {strides = array<i32>} : memref<32x512xf32, #tpu.memory_space<vmem>>, vector<32x512xf32>,
    %c0_23 = arith.constant 0 : index
    %c0_24 = arith.constant 0 : index
    %c0_25 = arith.constant 0 : index
    %27 = vector.load %arg4[%c0_23, %c0_24, %c0_25] : memref<3x32x32xf32, #tpu.memory_space<vmem>>, vector<1x32x32xf32>
    %28 = vector.shape_cast %27 : vector<1x32x32xf32> to vector<32x32xf32>
    %cst_26 = arith.constant dense<0.000000e+00> : vector<32x512xf32>
    %29 = tpu.matmul %28, %0, %cst_26 {dimension_numbers = #tpu.dot_dimension_numbers<[0], [0], [1], [1], [0, 1, 1, 1], [], []>} : vector<32x32xf32>, vector<32x512xf32>, vector<32x512xf32> -> vector<32x512xf32>
    %c0_27 = arith.constant 0 : index
    %c0_28 = arith.constant 0 : index
    %c0_29 = arith.constant 0 : index
    %30 = vector.load %arg5[%c0_27, %c0_28, %c0_29] : memref<3x32x1xf32, #tpu.memory_space<vmem>>, vector<1x32x1xf32>
    %31 = vector.shape_cast %30 : vector<1x32x1xf32> to vector<32x1xf32>
    %32 = vector.broadcast %31 : vector<32x1xf32> to vector<32x512xf32>
    %33 = arith.addf %29, %32 : vector<32x512xf32>
    %cst_30 = arith.constant 0.000000e+00 : f32
    %34 = vector.broadcast %cst_30 : f32 to vector<32x512xf32>
    %35 = arith.maximumf %33, %34 : vector<32x512xf32>
    %c1_31 = arith.constant 1 : index
    %c0_32 = arith.constant 0 : index
    %c0_33 = arith.constant 0 : index
    %36 = vector.load %arg4[%c1_31, %c0_32, %c0_33] : memref<3x32x32xf32, #tpu.memory_space<vmem>>, vector<1x32x32xf32>
    %37 = vector.shape_cast %36 : vector<1x32x32xf32> to vector<32x32xf32>
    %cst_34 = arith.constant dense<0.000000e+00> : vector<32x512xf32>
    %38 = tpu.matmul %37, %35, %cst_34 {dimension_numbers = #tpu.dot_dimension_numbers<[0], [0], [1], [1], [0, 1, 1, 1], [], []>} : vector<32x32xf32>, vector<32x512xf32>, vector<32x512xf32> -> vector<32x512xf32>
    %c1_35 = arith.constant 1 : index
    %c0_36 = arith.constant 0 : index
    %c0_37 = arith.constant 0 : index
    %39 = vector.load %arg5[%c1_35, %c0_36, %c0_37] : memref<3x32x1xf32, #tpu.memory_space<vmem>>, vector<1x32x1xf32>
    %40 = vector.shape_cast %39 : vector<1x32x1xf32> to vector<32x1xf32>
    %41 = vector.broadcast %40 : vector<32x1xf32> to vector<32x512xf32>
    %42 = arith.addf %38, %41 : vector<32x512xf32>
    %cst_38 = arith.constant 0.000000e+00 : f32
    %43 = vector.broadcast %cst_38 : f32 to vector<32x512xf32>
    %44 = arith.maximumf %42, %43 : vector<32x512xf32>
    %c2_39 = arith.constant 2 : index
    %c0_40 = arith.constant 0 : index
    %c0_41 = arith.constant 0 : index
    %45 = vector.load %arg4[%c2_39, %c0_40, %c0_41] : memref<3x32x32xf32, #tpu.memory_space<vmem>>, vector<1x32x32xf32>
    %46 = vector.shape_cast %45 : vector<1x32x32xf32> to vector<32x32xf32>
    %cst_42 = arith.constant dense<0.000000e+00> : vector<32x512xf32>
    %47 = tpu.matmul %46, %44, %cst_42 {dimension_numbers = #tpu.dot_dimension_numbers<[0], [0], [1], [1], [0, 1, 1, 1], [], []>} : vector<32x32xf32>, vector<32x512xf32>, vector<32x512xf32> -> vector<32x512xf32>
    %c2_43 = arith.constant 2 : index
    %c0_44 = arith.constant 0 : index
    %c0_45 = arith.constant 0 : index
    %48 = vector.load %arg5[%c2_43, %c0_44, %c0_45] : memref<3x32x1xf32, #tpu.memory_space<vmem>>, vector<1x32x1xf32>
    %49 = vector.shape_cast %48 : vector<1x32x1xf32> to vector<32x1xf32>
    %50 = vector.broadcast %49 : vector<32x1xf32> to vector<32x512xf32>
    %51 = arith.addf %47, %50 : vector<32x512xf32>
    %c0_46 = arith.constant 0 : index
    %c0_47 = arith.constant 0 : index
    %52 = vector.load %arg7[%c0_46, %c0_47] : memref<32x512xf32, #tpu.memory_space<vmem>>, vector<32x512xf32>
    tpu.vector_store %arg7[%c0_46, %c0_47], %51 {strides = array<i32>} : memref<32x512xf32, #tpu.memory_space<vmem>>, vector<32x512xf32>,
    return
  }
  func.func @transform_0(%arg0: i32) -> (i32, i32) {
    %c0_i32 = arith.constant 0 : i32
    %c0_i32_0 = arith.constant 0 : i32
    return %c0_i32, %arg0 : i32, i32
  }
  func.func @transform_1(%arg0: i32) -> (i32, i32, i32) {
    %c0_i32 = arith.constant 0 : i32
    %c0_i32_0 = arith.constant 0 : i32
    %c0_i32_1 = arith.constant 0 : i32
    %c0_i32_2 = arith.constant 0 : i32
    return %c0_i32, %c0_i32_0, %c0_i32_1 : i32, i32, i32
  }
  func.func @transform_2(%arg0: i32) -> (i32, i32, i32) {
    %c0_i32 = arith.constant 0 : i32
    %c0_i32_0 = arith.constant 0 : i32
    %c0_i32_1 = arith.constant 0 : i32
    %c0_i32_2 = arith.constant 0 : i32
    return %c0_i32, %c0_i32_0, %c0_i32_1 : i32, i32, i32
  }
  func.func @transform_3(%arg0: i32) -> (i32, i32, i32) {
    %c0_i32 = arith.constant 0 : i32
    %c0_i32_0 = arith.constant 0 : i32
    %c0_i32_1 = arith.constant 0 : i32
    %c0_i32_2 = arith.constant 0 : i32
    return %c0_i32, %c0_i32_0, %c0_i32_1 : i32, i32, i32
  }
  func.func @transform_4(%arg0: i32) -> (i32, i32, i32) {
    %c0_i32 = arith.constant 0 : i32
    %c0_i32_0 = arith.constant 0 : i32
    %c0_i32_1 = arith.constant 0 : i32
    %c0_i32_2 = arith.constant 0 : i32
    return %c0_i32, %c0_i32_0, %c0_i32_1 : i32, i32, i32
  }
  func.func @transform_5(%arg0: i32) -> (i32, i32) {
    %c0_i32 = arith.constant 0 : i32
    %c0_i32_0 = arith.constant 0 : i32
    return %c0_i32, %arg0 : i32, i32
  }
  func.func @transform_6(%arg0: i32) -> (i32, i32) {
    %c0_i32 = arith.constant 0 : i32
    %c0_i32_0 = arith.constant 0 : i32
    return %c0_i32, %arg0 : i32, i32
  }
}

</mosaic_0001>

<bundles_post_ra>
// kernel: tpu_custom_call.1
= control target key start
LH: loop header
LB: loop body
LE: loop exit
PB: predicated region body
PF: predicated region fallthrough
CT: control target
= control target key end

     0   :  { %12 = vsyncpa [#allocation3], 0  ;;  %s2296_s0 = inlined_call_operand.vmem [shape: f32[32,512], index: 0, kind: input, shape index: {}]   ;;  %s2297_s1 = inlined_call_operand.hbm [shape: f32[3,32,32], index: 1, kind: input, shape index: {}]   ;;  %s2298_s2 = inlined_call_operand.vmem [shape: f32[3,32,1], index: 2, kind: input, shape index: {}]   ;;  %s2299_s3 = inlined_call_operand.hbm [shape: f32[3,32,32], index: 3, kind: input, shape index: {}]   ;;  %s2300_s4 = inlined_call_operand.vmem [shape: f32[3,32,1], index: 4, kind: input, shape index: {}]   ;;  %s2301_s5 = inlined_call_operand.hbm [shape: f32[32,512], index: 5, kind: output, shape index: {0}]   ;;  %s2302_s6 = inlined_call_operand.hbm [shape: f32[32,512], index: 6, kind: output, shape index: {1}]  }
   0x1   :  { %13 = vsyncpa [#allocation6], 0 }
   0x2   :  { %14 = vsyncpa [#allocation4], 0 }
   0x3   :  { %15 = vsyncpa [#allocation9], 0  ;;  %s1871_s21 = smov [#allocation2]  }
   0x4   :  { %s23_s22 = sshll.u32 %s1871_s21, 4  ;;  %s24_s22 = int_to_ptr.vmem [resolvable:$true] %s23_s22 }
   0x5   :  { %s1791_s23 = scalar_lea.vmem %s24_s22, 1536  ;;  %p1796_p1 = scmp.lt.s32.totalorder %s24_s22, %s24_s22 }
   0x6   :  { %p1792_p0 = scmp.ne.s32.totalorder %s24_s22, %s1791_s23  ;;  %p1797_p2 = scmp.lt.s32.totalorder %s1791_s23, %s1791_s23 }
   0x8   :  { %p1798_p3 = por %p1797_p2, %p1796_p1 }
   0xa   :  { %p1799_p4 = pnand %p1798_p3, %p1792_p0 }
   0xc   :  { %1802 = shalt.err (!%p1799_p4)
}
   0xd   :  { %s1872_s24 = smov 128   ;;  %s1873_s25 = smov 8  }
   0xe   :  { %29 = dma.hbm_to_vmem [thread:$0]  %s2297_s1, 1536, %s24_s22, [#allocation3], %s1872_s24, %s1872_s24, %s1873_s25  }
   0xf   :  { %s1874_s28 = smov [#allocation5]  }
  0x10   :  { %s37_s29 = sshll.u32 %s1874_s28, 4  ;;  %s38_s29 = int_to_ptr.vmem [resolvable:$true] %s37_s29 }
  0x11   :  { %s1811_s30 = scalar_lea.vmem %s38_s29, 1536  ;;  %p1816_p6 = scmp.lt.s32.totalorder %s38_s29, %s38_s29 }
  0x12   :  { %p1812_p5 = scmp.ne.s32.totalorder %s38_s29, %s1811_s30  ;;  %p1817_p7 = scmp.lt.s32.totalorder %s1811_s30, %s1811_s30 }
  0x14   :  { %p1818_p8 = por %p1817_p7, %p1816_p6 }
  0x16   :  { %p1819_p9 = pnand %p1818_p8, %p1812_p5 }
  0x18   :  { %1822 = shalt.err (!%p1819_p9)
}
  0x19   :  { %43 = dma.hbm_to_vmem [thread:$0]  %s2299_s3, 1536, %s38_s29, [#allocation6], %s1872_s24, %s1872_s24, %s1873_s25  }
  0x1a   :  { %1863 = dma.done.wait [#allocation3], 1536  }
  0x1b   :  { %1864 = vsyncadd [#allocation3], 4294965760 }
  0x1c   :  { %1865 = dma.done.wait [#allocation6], 1536  }
  0x1d   :  { %1866 = vsyncadd [#allocation6], 4294965760  ;;  %v1875_v0 = vmov 0   ;;  %v1876_v1 = vmov 0.0   ;;  %v75_v2 = vld [vmem:[%s2298_s2 + $0x18] sm:$0xff]  ;;  %v68_v3 = vld [vmem:[#allocation2] sm:$0xff] }
  0x1e   :  { %1781 = vset.pattern.permute.xlu1 %v1875_v0  ;;  %205 = vmatprep.mubr.f32.mxu0 %v1876_v1  ;;  %v74_v4 = vld [vmem:[%s2298_s2 + $0x10] sm:$0xff]  ;;  %v69_v5 = vld [vmem:[#allocation2 + $0x8] sm:$0xff]  ;;  %v1942_v9 = vld [vmem:[%s2296_s0 + $0x78] sm:$0xff]  ;;  %vm128_vm0 = vcmask 261120  }
  0x1f   :  { %294 = vmatprep.mubr.f32.mxu1 %v1876_v1  ;;  %93 = vperm.xlu1 %1781, %v75_v2   ;;  %v73_v6 = vld [vmem:[%s2298_s2 + $0x8] sm:$0xff]  ;;  %v70_v7 = vld [vmem:[#allocation2 + $0x10] sm:$0xff]  ;;  %v1947_v10 = vld [vmem:[%s2296_s0 + $0x60] sm:$0xff] }
  0x20   :  { %96 = vxpose.xlu0.b32.start [1/4] (short) (narrow) %v68_v3, 32  ;;  %v1937_v8 = vld [vmem:[%s2296_s0 + $0x68] sm:$0xff]  ;;  %254 = vmatprep.subr.mxu1 %v1942_v9  ;;  %v1954_v11 = vld [vmem:[%s2296_s0 + $0x70] sm:$0xff]  ;;  %v1966_v13 = vld [vmem:[%s2296_s0 + $0x58] sm:$0xff] }
  0x21   :  { %165 = vmatprep.subr.mxu0 %v1937_v8  ;;  %v1959_v12 = vld [vmem:[%s2296_s0 + $0x48] sm:$0xff]  ;;  %255 = vmatpush1.msra.mxu1 %v1954_v11  ;;  %v1971_v14 = vld [vmem:[%s2296_s0 + $0x40] sm:$0xff]  ;;  %v1976_v15 = vld [vmem:[%s2296_s0 + $0x50] sm:$0xff] }
  0x22   :  { %166 = vmatpush1.msra.mxu0 %v1947_v10  ;;  %v1981_v16 = vld [vmem:[%s2296_s0 + $0x28] sm:$0xff]  ;;  %v1986_v17 = vld [vmem:[%s2296_s0 + $0x38] sm:$0xff]  ;;  %v72_v18 = vld [vmem:[%s2298_s2] sm:$0xff]  ;;  %256 = vmatprep.subr.mxu1 %v1966_v13 }
  0x23   :  { %88 = vperm.xlu1 %1781, %v74_v4   ;;  %v71_v19 = vld [vmem:[#allocation2 + $0x18] sm:$0xff]  ;;  %167 = vmatprep.subr.mxu0 %v1959_v12  ;;  %v1998_v20 = vld [vmem:[%s2296_s0 + $0x20] sm:$0xff]  ;;  %v2003_v21 = vld [vmem:[%s2296_s0 + $0x30] sm:$0xff] }
  0x24   :  { %97 = vxpose.xlu0.b32.cont [2/4] (short) (narrow) %v69_v5, 32  ;;  %168 = vmatpush1.msra.mxu0 %v1971_v14  ;;  %v2010_v22 = vld [vmem:[%s2296_s0 + $0x8] sm:$0xff]  ;;  %v2015_v23 = vld [vmem:[%s2296_s0 + $0x18] sm:$0xff]  ;;  %v2020_v24 = vld [vmem:[%s2296_s0] sm:$0xff] }
  0x25   :  { %257 = vmatpush1.msra.mxu1 %v1976_v15  ;;  %169 = vmatprep.subr.mxu0 %v1981_v16  ;;  %v2025_v25 = vld [vmem:[%s2296_s0 + $0x10] sm:$0xff]  ;;  %v1718_v26 = vld [vmem:[%s2298_s2 + $0x38] sm:$0xff]  ;;  %v1716_v28 = vld [vmem:[%s2298_s2 + $0x28] sm:$0xff] }
  0x26   :  { %258 = vmatprep.subr.mxu1 %v1986_v17  ;;  %170 = vmatpush1.msra.mxu0 %v1998_v20  ;;  %v1717_v27 = vld [vmem:[%s2298_s2 + $0x30] sm:$0xff]  ;;  %v1715_v29 = vld [vmem:[%s2298_s2 + $0x20] sm:$0xff]  ;;  %v872_v31 = vld [vmem:[#allocation5 + $0x8] sm:$0xff] }
  0x27   :  { %83 = vperm.xlu1 %1781, %v73_v6   ;;  %259 = vmatpush1.msra.mxu1 %v2003_v21  ;;  %v871_v30 = vld [vmem:[#allocation5] sm:$0xff]  ;;  %v873_v32 = vld [vmem:[#allocation5 + $0x10] sm:$0xff]  ;;  %v874_v33 = vld [vmem:[#allocation5 + $0x18] sm:$0xff] }
  0x28   :  { %98 = vxpose.xlu0.b32.cont [3/4] (short) (narrow) %v70_v7, 32  ;;  %171 = vmatprep.subr.mxu0 %v2010_v22  ;;  %v336_v34 = vld [vmem:[#allocation2 + $0x20] sm:$0xff]  ;;  %v337_v35 = vld [vmem:[#allocation2 + $0x28] sm:$0xff]  ;;  %v338_v36 = vld [vmem:[#allocation2 + $0x30] sm:$0xff] }
  0x29   :  { %260 = vmatprep.subr.mxu1 %v2015_v23  ;;  %172 = vmatpush1.msra.mxu0 %v2020_v24  ;;  %v339_v37 = vld [vmem:[#allocation2 + $0x38] sm:$0xff]  ;;  %v877_v38 = vld [vmem:[%s2300_s4 + $0x10] sm:$0xff]  ;;  %v1748_v41 = vld [vmem:[%s2300_s4 + $0x28] sm:$0xff] }
  0x2a   :  { %261 = vmatpush1.msra.mxu1 %v2025_v25  ;;  %v1750_v39 = vld [vmem:[%s2300_s4 + $0x38] sm:$0xff]  ;;  %v1749_v40 = vld [vmem:[%s2300_s4 + $0x30] sm:$0xff]  ;;  %v1747_v43 = vld [vmem:[%s2300_s4 + $0x20] sm:$0xff] }
  0x2b   :  { %78 = vperm.xlu1 %1781, %v72_v18   ;;  %v1406_v47 = vld [vmem:[#allocation5 + $0x40] sm:$0xff]  ;;  %v1407_v48 = vld [vmem:[#allocation5 + $0x48] sm:$0xff]  ;;  %v1408_v49 = vld [vmem:[#allocation5 + $0x50] sm:$0xff] }
  0x2c   :  { %99 = vxpose.xlu0.b32.end [4/4] (short) (narrow) %v71_v19, 32  ;;  %v1409_v50 = vld [vmem:[#allocation5 + $0x58] sm:$0xff]  ;;  %v604_v52 = vld [vmem:[#allocation2 + $0x40] sm:$0xff]  ;;  %v605_v53 = vld [vmem:[#allocation2 + $0x48] sm:$0xff] }
  0x2d   :  { %v1730_v51 = vld [vmem:[%s2298_s2 + $0x58] sm:$0xff]  ;;  %v606_v54 = vld [vmem:[#allocation2 + $0x50] sm:$0xff]  ;;  %v876_v57 = vld [vmem:[%s2300_s4 + $0x8] sm:$0xff] }
  0x2e   :  { %v607_v55 = vld [vmem:[#allocation2 + $0x58] sm:$0xff]  ;;  %v875_v58 = vld [vmem:[%s2300_s4] sm:$0xff] }
  0x2f   :  { %362 = vperm.xlu1 %1781, %v1718_v26   ;;  %v878_v56 = vld [vmem:[%s2300_s4 + $0x18] sm:$0xff] }
  0x30   :  { %365 = vxpose.xlu0.b32.start [1/4] (short) (narrow) %v336_v34, 32 }
  0x33   :  { %357 = vperm.xlu1 %1781, %v1717_v27  }
  0x34   :  { %366 = vxpose.xlu0.b32.cont [2/4] (short) (narrow) %v337_v35, 32 }
  0x37   :  { %352 = vperm.xlu1 %1781, %v1716_v28  }
  0x38   :  { %367 = vxpose.xlu0.b32.cont [3/4] (short) (narrow) %v338_v36, 32 }
  0x3b   :  { %347 = vperm.xlu1 %1781, %v1715_v29  }
  0x3c   :  { %368 = vxpose.xlu0.b32.end [4/4] (short) (narrow) %v339_v37, 32 }
  0x40   :  { %633 = vxpose.xlu0.b32.start [1/4] (short) (narrow) %v604_v52, 32 }
  0x44   :  { %634 = vxpose.xlu0.b32.cont [2/4] (short) (narrow) %v605_v53, 32 }
  0x48   :  { %635 = vxpose.xlu0.b32.cont [3/4] (short) (narrow) %v606_v54, 32 }
  0x4c   :  { %636 = vxpose.xlu0.b32.end [4/4] (short) (narrow) %v607_v55, 32 }
  0x64   :  { %899 = vxpose.xlu1.b32.start [1/4] (short) (narrow) %v871_v30, 32 }
  0x68   :  { %900 = vxpose.xlu1.b32.cont [2/4] (short) (narrow) %v872_v31, 32 }
  0x6c   :  { %901 = vxpose.xlu1.b32.cont [3/4] (short) (narrow) %v873_v32, 32 }
  0x70   :  { %902 = vxpose.xlu1.b32.end [4/4] (short) (narrow) %v874_v33, 32 }
  0x75   :  { %1782 = vset.pattern.permute.xlu0 %v1875_v0 }
  0x76   :  { %896 = vperm.xlu0 %1782, %v878_v56  }
  0x7a   :  { %886 = vperm.xlu0 %1782, %v876_v57  }
  0x7e   :  { %881 = vperm.xlu0 %1782, %v875_v58  }
  0x8e   :  { %891 = vperm.xlu1 %1781, %v877_v38  }
  0x92   :  { %1164 = vperm.xlu1 %1781, %v1750_v39  }
  0x96   :  { %1159 = vperm.xlu1 %1781, %v1749_v40  }
  0x9a   :  { %1154 = vperm.xlu1 %1781, %v1748_v41   ;;  %v94_v59 = vpop.permute.xlu1 %93 }
  0x9c   :  { %v112_v42 = vpop.trf.xlu0 }
  0x9d   :  { %1707 = vmatmul.mubr.msk.f32.vlgmr.msra.gmra.mxu0 %vm128_vm0, %v112_v42  ;;  %1711 = vmatmul.mubr.msk.f32.vlgmr.msra.gmra.mxu1 %vm128_vm0, %v112_v42 }
  0x9e   :  { %211 = vmatprep.mubr.f32.mxu0 %v1876_v1  ;;  %300 = vmatprep.mubr.f32.mxu1 %v1876_v1  ;;  %v89_v4 = vpop.permute.xlu1 %88 }
  0x9f   :  { %1149 = vperm.xlu1 %1781, %v1747_v43  }
  0xa0   :  { %v113_v44 = vpop.trf.xlu0 }
  0xa1   :  { %1708 = vmatmul.mubr.msk.f32.gmra.mxu0 %vm128_vm0, %v113_v44  ;;  %1712 = vmatmul.mubr.msk.f32.gmra.mxu1 %vm128_vm0, %v113_v44 }
  0xa2   :  { %217 = vmatprep.mubr.f32.mxu0 %v1876_v1  ;;  %306 = vmatprep.mubr.f32.mxu1 %v1876_v1  ;;  %v84_v26 = vpop.permute.xlu1 %83 }
  0xa4   :  { %v114_v45 = vpop.trf.xlu0 }
  0xa5   :  { %1709 = vmatmul.mubr.msk.f32.gmra.mxu0 %vm128_vm0, %v114_v45  ;;  %1713 = vmatmul.mubr.msk.f32.gmra.mxu1 %vm128_vm0, %v114_v45 }
  0xa6   :  { %223 = vmatprep.mubr.f32.mxu0 %v1876_v1  ;;  %312 = vmatprep.mubr.f32.mxu1 %v1876_v1  ;;  %v79_v43 = vpop.permute.xlu1 %78 }
  0xa8   :  { %v115_v46 = vpop.trf.xlu0 }
  0xa9   :  { %1710 = vmatmul.mubr.msk.f32.gmra.mxu0 %vm128_vm0, %v115_v46  ;;  %1714 = vmatmul.mubr.msk.f32.gmra.mxu1 %vm128_vm0, %v115_v46 }
  0xaa   :  { %473 = vmatprep.mubr.f32.mxu0 %v1876_v1  ;;  %562 = vmatprep.mubr.f32.mxu1 %v1876_v1 }
  0xc8   :  { %1435 = vxpose.xlu1.b32.start [1/4] (short) (narrow) %v1406_v47, 32 }
  0xcc   :  { %1436 = vxpose.xlu1.b32.cont [2/4] (short) (narrow) %v1407_v48, 32  ;;  %v381_v48 = vpop.trf.xlu0 }
  0xd0   :  { %1437 = vxpose.xlu1.b32.cont [3/4] (short) (narrow) %v1408_v49, 32 }
  0xd4   :  { %1438 = vxpose.xlu1.b32.end [4/4] (short) (narrow) %v1409_v50, 32 }
  0xf2   :  { %630 = vperm.xlu1 %1781, %v1730_v51  }
 0x15d   :  { %v207_v60 = vpop.f32.mrf.mxu0  ;;  %v296_v61 = vpop.f32.mrf.mxu1 }
 0x15e   :  { %v208_v53 = vadd.f32 %v207_v60, %v79_v43  ;;  %v297_v54 = vadd.f32 %v296_v61, %v79_v43  ;;  %v382_v60 = vpop.trf.xlu0 }
 0x15f   :  { %v209_v62 = vpop.f32.mrf.mxu0  ;;  %v298_v63 = vpop.f32.mrf.mxu1 }
 0x160   :  { %v210_v49 = vadd.f32 %v209_v62, %v79_v43  ;;  %v299_v50 = vadd.f32 %v298_v63, %v79_v43 }
 0x161   :  { %v213_v2 = vpop.f32.mrf.mxu0  ;;  %v302_v3 = vpop.f32.mrf.mxu1 }
 0x162   :  { %v214_v44 = vadd.f32 %v213_v2, %v84_v26  ;;  %v303_v45 = vadd.f32 %v302_v3, %v84_v26  ;;  %v320_v62 = vmax.f32 %v210_v49, 0.0  ;;  %v322_v63 = vmax.f32 %v299_v50, 0.0  ;;  %v383_v61 = vpop.trf.xlu0 }
 0x163   :  { %v215_v0 = vpop.f32.mrf.mxu0  ;;  %v304_v5 = vpop.f32.mrf.mxu1  ;;  %v319_v3 = vmax.f32 %v208_v53, 0.0 }
 0x164   :  { %v216_v39 = vadd.f32 %v215_v0, %v84_v26  ;;  %v305_v40 = vadd.f32 %v304_v5, %v84_v26  ;;  %v325_v2 = vmax.f32 %v303_v45, 0.0  ;;  %v1138_v5 = vld [vmem:[#allocation5 + $0x20] sm:$0xff]  ;;  %v1728_v26 = vld [vmem:[%s2298_s2 + $0x48] sm:$0xff] }
 0x165   :  { %v219_v6 = vpop.f32.mrf.mxu0  ;;  %v308_v7 = vpop.f32.mrf.mxu1  ;;  %1167 = vxpose.xlu0.b32.start [1/4] (short) (narrow) %v1138_v5, 32 }
 0x166   :  { %v220_v37 = vadd.f32 %v219_v6, %v89_v4  ;;  %v309_v38 = vadd.f32 %v308_v7, %v89_v4  ;;  %v324_v57 = vmax.f32 %v216_v39, 0.0  ;;  %v326_v58 = vmax.f32 %v305_v40, 0.0  ;;  %v384_v0 = vpop.trf.xlu0  ;;  %v1139_v6 = vld [vmem:[#allocation5 + $0x28] sm:$0xff]  ;;  %v1140_v7 = vld [vmem:[#allocation5 + $0x30] sm:$0xff] }
 0x167   :  { %v221_v18 = vpop.f32.mrf.mxu0  ;;  %v310_v19 = vpop.f32.mrf.mxu1 }
 0x168   :  { %v222_v33 = vadd.f32 %v221_v18, %v89_v4  ;;  %v311_v34 = vadd.f32 %v310_v19, %v89_v4  ;;  %v327_v55 = vmax.f32 %v220_v37, 0.0  ;;  %v329_v56 = vmax.f32 %v309_v38, 0.0  ;;  %v1141_v18 = vld [vmem:[#allocation5 + $0x38] sm:$0xff]  ;;  %v1727_v19 = vld [vmem:[%s2298_s2 + $0x40] sm:$0xff] }
 0x169   :  { %v225_v27 = vpop.f32.mrf.mxu0  ;;  %v314_v28 = vpop.f32.mrf.mxu1  ;;  %v321_v4 = vmax.f32 %v297_v54, 0.0  ;;  %1168 = vxpose.xlu0.b32.cont [2/4] (short) (narrow) %v1139_v6, 32 }
 0x16a   :  { %v226_v29 = vadd.f32 %v225_v27, %v94_v59  ;;  %v315_v30 = vadd.f32 %v314_v28, %v94_v59  ;;  %v328_v51 = vmax.f32 %v222_v33, 0.0  ;;  %v330_v52 = vmax.f32 %v311_v34, 0.0  ;;  %v1729_v27 = vld [vmem:[%s2298_s2 + $0x50] sm:$0xff]  ;;  %v1759_v28 = vld [vmem:[%s2300_s4 + $0x40] sm:$0xff]  ;;  %v649_v5 = vpop.trf.xlu0  ;;  %s1877_s2 = smov [#allocation7]  }
 0x16b   :  { %v227_v31 = vpop.f32.mrf.mxu0  ;;  %v316_v32 = vpop.f32.mrf.mxu1 }
 0x16c   :  { %v228_v35 = vadd.f32 %v227_v31, %v94_v59  ;;  %v317_v36 = vadd.f32 %v316_v32, %v94_v59  ;;  %v331_v46 = vmax.f32 %v226_v29, 0.0  ;;  %v333_v47 = vmax.f32 %v315_v30, 0.0  ;;  %v1760_v29 = vld [vmem:[%s2300_s4 + $0x48] sm:$0xff]  ;;  %v1761_v30 = vld [vmem:[%s2300_s4 + $0x50] sm:$0xff]  ;;  %v1762_v31 = vld [vmem:[%s2300_s4 + $0x58] sm:$0xff]  ;;  %v363_v32 = vpop.permute.xlu1 %362  ;;  %s1678_s4 = sshll.u32 %s1877_s2, 4  ;;  %s1679_s4 = int_to_ptr.vmem [resolvable:$true] %s1678_s4 }
 0x16d   :  { %v323_v59 = vmax.f32 %v214_v44, 0.0  ;;  %1169 = vxpose.xlu0.b32.cont [3/4] (short) (narrow) %v1140_v7, 32  ;;  %s1823_s1 = scalar_lea.vmem %s1679_s4, 2048  ;;  %p1828_p11 = scmp.lt.s32.totalorder %s1679_s4, %s1679_s4 }
 0x16e   :  { %v332_v41 = vmax.f32 %v228_v35, 0.0  ;;  %v334_v42 = vmax.f32 %v317_v36, 0.0  ;;  %p1824_p10 = scmp.ne.s32.totalorder %s1679_s4, %s1823_s1  ;;  %p1829_p12 = scmp.lt.s32.totalorder %s1823_s1, %s1823_s1 }
 0x170   :  { %433 = vmatprep.subr.mxu0 %v332_v41  ;;  %522 = vmatprep.subr.mxu1 %v334_v42  ;;  %v358_v39 = vpop.permute.xlu1 %357  ;;  %p1830_p13 = por %p1829_p12, %p1828_p11 }
 0x171   :  { %434 = vmatpush1.msra.mxu0 %v331_v46  ;;  %523 = vmatpush1.msra.mxu1 %v333_v47 }
 0x172   :  { %435 = vmatprep.subr.mxu0 %v328_v51  ;;  %524 = vmatprep.subr.mxu1 %v330_v52  ;;  %p1831_p0 = pnand %p1830_p13, %p1824_p10 }
 0x173   :  { %436 = vmatpush1.msra.mxu0 %v327_v55  ;;  %525 = vmatpush1.msra.mxu1 %v329_v56 }
 0x174   :  { %437 = vmatprep.subr.mxu0 %v324_v57  ;;  %526 = vmatprep.subr.mxu1 %v326_v58  ;;  %v353_v46 = vpop.permute.xlu1 %352 }
 0x175   :  { %438 = vmatpush1.msra.mxu0 %v323_v59  ;;  %527 = vmatpush1.msra.mxu1 %v325_v2 }
 0x176   :  { %439 = vmatprep.subr.mxu0 %v320_v62  ;;  %528 = vmatprep.subr.mxu1 %v322_v63 }
 0x177   :  { %440 = vmatpush1.msra.mxu0 %v319_v3  ;;  %529 = vmatpush1.msra.mxu1 %v321_v4 }
 0x178   :  { %1719 = vmatmul.mubr.msk.f32.vlgmr.msra.gmra.mxu0 %vm128_vm0, %v381_v48  ;;  %1723 = vmatmul.mubr.msk.f32.vlgmr.msra.gmra.mxu1 %vm128_vm0, %v381_v48  ;;  %v348_v3 = vpop.permute.xlu1 %347 }
 0x179   :  { %479 = vmatprep.mubr.f32.mxu0 %v1876_v1  ;;  %568 = vmatprep.mubr.f32.mxu1 %v1876_v1 }
 0x17a   :  { %1170 = vxpose.xlu0.b32.end [4/4] (short) (narrow) %v1141_v18, 32 }
 0x17c   :  { %1720 = vmatmul.mubr.msk.f32.gmra.mxu0 %vm128_vm0, %v382_v60  ;;  %1724 = vmatmul.mubr.msk.f32.gmra.mxu1 %vm128_vm0, %v382_v60 }
 0x17d   :  { %485 = vmatprep.mubr.f32.mxu0 %v1876_v1  ;;  %574 = vmatprep.mubr.f32.mxu1 %v1876_v1 }
 0x180   :  { %1721 = vmatmul.mubr.msk.f32.gmra.mxu0 %vm128_vm0, %v383_v61  ;;  %1725 = vmatmul.mubr.msk.f32.gmra.mxu1 %vm128_vm0, %v383_v61 }
 0x181   :  { %491 = vmatprep.mubr.f32.mxu0 %v1876_v1  ;;  %580 = vmatprep.mubr.f32.mxu1 %v1876_v1 }
 0x184   :  { %1722 = vmatmul.mubr.msk.f32.gmra.mxu0 %vm128_vm0, %v384_v0  ;;  %1726 = vmatmul.mubr.msk.f32.gmra.mxu1 %vm128_vm0, %v384_v0 }
 0x185   :  { %741 = vmatprep.mubr.f32.mxu0 %v1876_v1  ;;  %830 = vmatprep.mubr.f32.mxu1 %v1876_v1 }
 0x1a3   :  { %615 = vperm.xlu0 %1782, %v1727_v19  }
 0x1a7   :  { %620 = vperm.xlu0 %1782, %v1728_v26  }
 0x1ab   :  { %625 = vperm.xlu0 %1782, %v1729_v27  }
 0x1af   :  { %1417 = vperm.xlu0 %1782, %v1759_v28  }
 0x1b3   :  { %1422 = vperm.xlu0 %1782, %v1760_v29  }
 0x1b7   :  { %1427 = vperm.xlu0 %1782, %v1761_v30  }
 0x1bb   :  { %1432 = vperm.xlu0 %1782, %v1762_v31  }
 0x238   :  { %v475_v33 = vpop.f32.mrf.mxu0  ;;  %v564_v34 = vpop.f32.mrf.mxu1 }
 0x239   :  { %v476_v26 = vadd.f32 %v475_v33, %v348_v3  ;;  %v565_v27 = vadd.f32 %v564_v34, %v348_v3  ;;  %v650_v33 = vpop.trf.xlu0 }
 0x23a   :  { %v477_v35 = vpop.f32.mrf.mxu0  ;;  %v566_v36 = vpop.f32.mrf.mxu1 }
 0x23b   :  { %v478_v6 = vadd.f32 %v477_v35, %v348_v3  ;;  %v567_v7 = vadd.f32 %v566_v36, %v348_v3 }
 0x23c   :  { %v481_v37 = vpop.f32.mrf.mxu0  ;;  %v570_v38 = vpop.f32.mrf.mxu1 }
 0x23d   :  { %v482_v4 = vadd.f32 %v481_v37, %v353_v46  ;;  %v571_v60 = vadd.f32 %v570_v38, %v353_v46  ;;  %v588_v35 = vmax.f32 %v478_v6, 0.0  ;;  %v590_v36 = vmax.f32 %v567_v7, 0.0  ;;  %v651_v34 = vpop.trf.xlu0 }
 0x23e   :  { %v483_v40 = vpop.f32.mrf.mxu0  ;;  %v572_v41 = vpop.f32.mrf.mxu1  ;;  %v587_v38 = vmax.f32 %v476_v26, 0.0 }
 0x23f   :  { %v484_v59 = vadd.f32 %v483_v40, %v353_v46  ;;  %v573_v2 = vadd.f32 %v572_v41, %v353_v46  ;;  %v593_v37 = vmax.f32 %v571_v60, 0.0 }
 0x240   :  { %v487_v42 = vpop.f32.mrf.mxu0  ;;  %v576_v43 = vpop.f32.mrf.mxu1 }
 0x241   :  { %v488_v57 = vadd.f32 %v487_v42, %v358_v39  ;;  %v577_v58 = vadd.f32 %v576_v43, %v358_v39  ;;  %v592_v30 = vmax.f32 %v484_v59, 0.0  ;;  %v594_v31 = vmax.f32 %v573_v2, 0.0 }
 0x242   :  { %v489_v44 = vpop.f32.mrf.mxu0  ;;  %v578_v45 = vpop.f32.mrf.mxu1 }
 0x243   :  { %v490_v53 = vadd.f32 %v489_v44, %v358_v39  ;;  %v579_v54 = vadd.f32 %v578_v45, %v358_v39  ;;  %v595_v28 = vmax.f32 %v488_v57, 0.0  ;;  %v597_v29 = vmax.f32 %v577_v58, 0.0 }
 0x244   :  { %v493_v47 = vpop.f32.mrf.mxu0  ;;  %v582_v48 = vpop.f32.mrf.mxu1  ;;  %v589_v39 = vmax.f32 %v565_v27, 0.0 }
 0x245   :  { %v494_v49 = vadd.f32 %v493_v47, %v363_v32  ;;  %v583_v50 = vadd.f32 %v582_v48, %v363_v32  ;;  %v596_v18 = vmax.f32 %v490_v53, 0.0  ;;  %v598_v19 = vmax.f32 %v579_v54, 0.0 }
 0x246   :  { %v495_v51 = vpop.f32.mrf.mxu0  ;;  %v584_v52 = vpop.f32.mrf.mxu1 }
 0x247   :  { %v496_v55 = vadd.f32 %v495_v51, %v363_v32  ;;  %v585_v56 = vadd.f32 %v584_v52, %v363_v32  ;;  %v599_v61 = vmax.f32 %v494_v49, 0.0  ;;  %v601_v0 = vmax.f32 %v583_v50, 0.0 }
 0x248   :  { %v591_v32 = vmax.f32 %v482_v4, 0.0 }
 0x249   :  { %v600_v62 = vmax.f32 %v496_v55, 0.0  ;;  %v602_v63 = vmax.f32 %v585_v56, 0.0 }
 0x24b   :  { %701 = vmatprep.subr.mxu0 %v600_v62  ;;  %790 = vmatprep.subr.mxu1 %v602_v63 }
 0x24c   :  { %702 = vmatpush1.msra.mxu0 %v599_v61  ;;  %791 = vmatpush1.msra.mxu1 %v601_v0 }
 0x24d   :  { %703 = vmatprep.subr.mxu0 %v596_v18  ;;  %792 = vmatprep.subr.mxu1 %v598_v19 }
 0x24e   :  { %704 = vmatpush1.msra.mxu0 %v595_v28  ;;  %793 = vmatpush1.msra.mxu1 %v597_v29 }
 0x24f   :  { %705 = vmatprep.subr.mxu0 %v592_v30  ;;  %794 = vmatprep.subr.mxu1 %v594_v31 }
 0x250   :  { %706 = vmatpush1.msra.mxu0 %v591_v32  ;;  %795 = vmatpush1.msra.mxu1 %v593_v37 }
 0x251   :  { %707 = vmatprep.subr.mxu0 %v588_v35  ;;  %796 = vmatprep.subr.mxu1 %v590_v36 }
 0x252   :  { %708 = vmatpush1.msra.mxu0 %v587_v38  ;;  %797 = vmatpush1.msra.mxu1 %v589_v39 }
 0x253   :  { %1731 = vmatmul.mubr.msk.f32.vlgmr.msra.gmra.mxu0 %vm128_vm0, %v649_v5  ;;  %1735 = vmatmul.mubr.msk.f32.vlgmr.msra.gmra.mxu1 %vm128_vm0, %v649_v5 }
 0x254   :  { %747 = vmatprep.mubr.f32.mxu0 %v1876_v1  ;;  %836 = vmatprep.mubr.f32.mxu1 %v1876_v1 }
 0x255   :  { %967 = vmatprep.subr.mxu0 %v1937_v8  ;;  %1056 = vmatprep.subr.mxu1 %v1942_v9  ;;  %v915_v8 = vpop.trf.xlu1  ;;  %v652_v9 = vpop.trf.xlu0 }
 0x256   :  { %968 = vmatpush1.msra.mxu0 %v1947_v10  ;;  %1057 = vmatpush1.msra.mxu1 %v1954_v11 }
 0x257   :  { %1732 = vmatmul.mubr.msk.f32.gmra.mxu0 %vm128_vm0, %v650_v33  ;;  %1736 = vmatmul.mubr.msk.f32.gmra.mxu1 %vm128_vm0, %v650_v33 }
 0x258   :  { %753 = vmatprep.mubr.f32.mxu0 %v1876_v1  ;;  %842 = vmatprep.mubr.f32.mxu1 %v1876_v1 }
 0x259   :  { %969 = vmatprep.subr.mxu0 %v1959_v12  ;;  %1058 = vmatprep.subr.mxu1 %v1966_v13  ;;  %v916_v10 = vpop.trf.xlu1  ;;  %v2174_v13 = vpop.permute.xlu0 %896 }
 0x25a   :  { %970 = vmatpush1.msra.mxu0 %v1971_v14  ;;  %1059 = vmatpush1.msra.mxu1 %v1976_v15 }
 0x25b   :  { %1733 = vmatmul.mubr.msk.f32.gmra.mxu0 %vm128_vm0, %v651_v34  ;;  %1737 = vmatmul.mubr.msk.f32.gmra.mxu1 %vm128_vm0, %v651_v34 }
 0x25c   :  { %759 = vmatprep.mubr.f32.mxu0 %v1876_v1  ;;  %848 = vmatprep.mubr.f32.mxu1 %v1876_v1 }
 0x25d   :  { %971 = vmatprep.subr.mxu0 %v1981_v16  ;;  %1060 = vmatprep.subr.mxu1 %v1986_v17  ;;  %v917_v11 = vpop.trf.xlu1  ;;  %v2178_v15 = vpop.permute.xlu0 %886 }
 0x25e   :  { %972 = vmatpush1.msra.mxu0 %v1998_v20  ;;  %1061 = vmatpush1.msra.mxu1 %v2003_v21 }
 0x25f   :  { %1734 = vmatmul.mubr.msk.f32.gmra.mxu0 %vm128_vm0, %v652_v9  ;;  %1738 = vmatmul.mubr.msk.f32.gmra.mxu1 %vm128_vm0, %v652_v9 }
 0x260   :  { %973 = vmatprep.subr.mxu0 %v2010_v22  ;;  %1062 = vmatprep.subr.mxu1 %v2015_v23 }
 0x261   :  { %974 = vmatpush1.msra.mxu0 %v2020_v24  ;;  %1007 = vmatprep.mubr.f32.mxu0 %v1876_v1  ;;  %v918_v12 = vpop.trf.xlu1  ;;  %v2182_v17 = vpop.permute.xlu0 %881 }
 0x262   :  { %1063 = vmatpush1.msra.mxu1 %v2025_v25  ;;  %1096 = vmatprep.mubr.f32.mxu1 %v1876_v1 }
 0x263   :  { %1739 = vmatmul.mubr.msk.f32.vlgmr.msra.gmra.mxu0 %vm128_vm0, %v915_v8  ;;  %1743 = vmatmul.mubr.msk.f32.vlgmr.msra.gmra.mxu1 %vm128_vm0, %v915_v8 }
 0x264   :  { %1013 = vmatprep.mubr.f32.mxu0 %v1876_v1  ;;  %1102 = vmatprep.mubr.f32.mxu1 %v1876_v1 }
 0x265   :  { %v2176_v14 = vpop.permute.xlu1 %891  ;;  %v2186_v21 = vpop.trf.xlu0 }
 0x267   :  { %1740 = vmatmul.mubr.msk.f32.gmra.mxu0 %vm128_vm0, %v916_v10  ;;  %1744 = vmatmul.mubr.msk.f32.gmra.mxu1 %vm128_vm0, %v916_v10 }
 0x268   :  { %1019 = vmatprep.mubr.f32.mxu0 %v1876_v1  ;;  %1108 = vmatprep.mubr.f32.mxu1 %v1876_v1 }
 0x269   :  { %v2180_v16 = vpop.permute.xlu1 %1164  ;;  %v2190_v23 = vpop.trf.xlu0 }
 0x26b   :  { %1741 = vmatmul.mubr.msk.f32.gmra.mxu0 %vm128_vm0, %v917_v11  ;;  %1745 = vmatmul.mubr.msk.f32.gmra.mxu1 %vm128_vm0, %v917_v11 }
 0x26c   :  { %1025 = vmatprep.mubr.f32.mxu0 %v1876_v1  ;;  %1114 = vmatprep.mubr.f32.mxu1 %v1876_v1 }
 0x26d   :  { %v2184_v20 = vpop.permute.xlu1 %1159  ;;  %v2194_v25 = vpop.trf.xlu0 }
 0x26f   :  { %1742 = vmatmul.mubr.msk.f32.gmra.mxu0 %vm128_vm0, %v918_v12  ;;  %1746 = vmatmul.mubr.msk.f32.gmra.mxu1 %vm128_vm0, %v918_v12 }
 0x270   :  { %1275 = vmatprep.mubr.f32.mxu0 %v1876_v1  ;;  %1364 = vmatprep.mubr.f32.mxu1 %v1876_v1 }
 0x271   :  { %v2188_v22 = vpop.permute.xlu1 %1154  ;;  %v2198_v41 = vpop.trf.xlu0 }
 0x275   :  { %v2192_v24 = vpop.permute.xlu1 %1149  ;;  %v616_v43 = vpop.permute.xlu0 %615 }
 0x279   :  { %v2196_v40 = vpop.trf.xlu1  ;;  %v621_v47 = vpop.permute.xlu0 %620 }
 0x27d   :  { %v2200_v42 = vpop.trf.xlu1  ;;  %v626_v62 = vpop.permute.xlu0 %625 }
 0x281   :  { %v2202_v44 = vpop.trf.xlu1 }
 0x285   :  { %v2204_v56 = vpop.trf.xlu1 }
 0x289   :  { %v631_v7 = vpop.permute.xlu1 %630 }
 0x313   :  { %v743_v45 = vpop.f32.mrf.mxu0  ;;  %v832_v46 = vpop.f32.mrf.mxu1 }
 0x314   :  { %v744_v48 = vadd.f32 %v743_v45, %v616_v43  ;;  %v833_v49 = vadd.f32 %v832_v46, %v616_v43 }
 0x315   :  { %v745_v50 = vpop.f32.mrf.mxu0  ;;  %v834_v51 = vpop.f32.mrf.mxu1 }
 0x316   :  { %855 = vst [vmem:[#allocation7] sm:$0xff] %v744_v48  ;;  %857 = vst [vmem:[#allocation7 + $0x10] sm:$0xff] %v833_v49  ;;  %v746_v52 = vadd.f32 %v745_v50, %v616_v43  ;;  %v835_v53 = vadd.f32 %v834_v51, %v616_v43 }
 0x317   :  { %v749_v54 = vpop.f32.mrf.mxu0  ;;  %v838_v55 = vpop.f32.mrf.mxu1 }
 0x318   :  { %856 = vst [vmem:[#allocation7 + $0x8] sm:$0xff] %v746_v52  ;;  %858 = vst [vmem:[#allocation7 + $0x18] sm:$0xff] %v835_v53  ;;  %v750_v57 = vadd.f32 %v749_v54, %v621_v47  ;;  %v839_v58 = vadd.f32 %v838_v55, %v621_v47 }
 0x319   :  { %v751_v59 = vpop.f32.mrf.mxu0  ;;  %v840_v2 = vpop.f32.mrf.mxu1 }
 0x31a   :  { %859 = vst [vmem:[#allocation7 + $0x20] sm:$0xff] %v750_v57  ;;  %861 = vst [vmem:[#allocation7 + $0x30] sm:$0xff] %v839_v58  ;;  %v752_v63 = vadd.f32 %v751_v59, %v621_v47  ;;  %v841_v3 = vadd.f32 %v840_v2, %v621_v47 }
 0x31b   :  { %v755_v4 = vpop.f32.mrf.mxu0  ;;  %v844_v60 = vpop.f32.mrf.mxu1 }
 0x31c   :  { %860 = vst [vmem:[#allocation7 + $0x28] sm:$0xff] %v752_v63  ;;  %862 = vst [vmem:[#allocation7 + $0x38] sm:$0xff] %v841_v3  ;;  %v756_v61 = vadd.f32 %v755_v4, %v626_v62  ;;  %v845_v0 = vadd.f32 %v844_v60, %v626_v62 }
 0x31d   :  { %v757_v5 = vpop.f32.mrf.mxu0  ;;  %v846_v6 = vpop.f32.mrf.mxu1 }
 0x31e   :  { %863 = vst [vmem:[#allocation7 + $0x40] sm:$0xff] %v756_v61  ;;  %865 = vst [vmem:[#allocation7 + $0x50] sm:$0xff] %v845_v0  ;;  %v758_v18 = vadd.f32 %v757_v5, %v626_v62  ;;  %v847_v19 = vadd.f32 %v846_v6, %v626_v62 }
 0x31f   :  { %v761_v26 = vpop.f32.mrf.mxu0  ;;  %v850_v27 = vpop.f32.mrf.mxu1 }
 0x320   :  { %864 = vst [vmem:[#allocation7 + $0x48] sm:$0xff] %v758_v18  ;;  %866 = vst [vmem:[#allocation7 + $0x58] sm:$0xff] %v847_v19  ;;  %v762_v28 = vadd.f32 %v761_v26, %v631_v7  ;;  %v851_v29 = vadd.f32 %v850_v27, %v631_v7 }
 0x321   :  { %v763_v30 = vpop.f32.mrf.mxu0  ;;  %v852_v31 = vpop.f32.mrf.mxu1 }
 0x322   :  { %867 = vst [vmem:[#allocation7 + $0x60] sm:$0xff] %v762_v28  ;;  %869 = vst [vmem:[#allocation7 + $0x70] sm:$0xff] %v851_v29  ;;  %v764_v32 = vadd.f32 %v763_v30, %v631_v7  ;;  %v853_v37 = vadd.f32 %v852_v31, %v631_v7 }
 0x323   :  { %v1009_v35 = vpop.f32.mrf.mxu0  ;;  %v1098_v36 = vpop.f32.mrf.mxu1 }
 0x324   :  { %868 = vst [vmem:[#allocation7 + $0x68] sm:$0xff] %v764_v32  ;;  %870 = vst [vmem:[#allocation7 + $0x78] sm:$0xff] %v853_v37  ;;  %v1099_v6 = vadd.f32 %v1098_v36, %v2182_v17 }
 0x325   :  { %v1011_v38 = vpop.f32.mrf.mxu0  ;;  %v1100_v39 = vpop.f32.mrf.mxu1 }
 0x326   :  { %v1012_v61 = vadd.f32 %v1011_v38, %v2182_v17  ;;  %v1123_v31 = vmax.f32 %v1099_v6, 0.0 }
 0x327   :  { %v1015_v33 = vpop.f32.mrf.mxu0  ;;  %v1104_v34 = vpop.f32.mrf.mxu1 }
 0x328   :  { %v1016_v63 = vadd.f32 %v1015_v33, %v2178_v15  ;;  %v1105_v3 = vadd.f32 %v1104_v34, %v2178_v15  ;;  %v1122_v28 = vmax.f32 %v1012_v61, 0.0 }
 0x329   :  { %v1017_v8 = vpop.f32.mrf.mxu0  ;;  %v1106_v9 = vpop.f32.mrf.mxu1 }
 0x32a   :  { %v1018_v58 = vadd.f32 %v1017_v8, %v2178_v15  ;;  %v1107_v59 = vadd.f32 %v1106_v9, %v2178_v15  ;;  %v1125_v26 = vmax.f32 %v1016_v63, 0.0  ;;  %v1127_v27 = vmax.f32 %v1105_v3, 0.0 }
 0x32b   :  { %v1021_v10 = vpop.f32.mrf.mxu0  ;;  %v1110_v11 = vpop.f32.mrf.mxu1 }
 0x32c   :  { %v1022_v55 = vadd.f32 %v1021_v10, %v2176_v14  ;;  %v1111_v57 = vadd.f32 %v1110_v11, %v2176_v14  ;;  %v1126_v19 = vmax.f32 %v1018_v58, 0.0  ;;  %v1128_v15 = vmax.f32 %v1107_v59, 0.0 }
 0x32d   :  { %v1023_v12 = vpop.f32.mrf.mxu0  ;;  %v1112_v43 = vpop.f32.mrf.mxu1 }
 0x32e   :  { %v1024_v51 = vadd.f32 %v1023_v12, %v2176_v14  ;;  %v1113_v52 = vadd.f32 %v1112_v43, %v2176_v14  ;;  %v1010_v14 = vadd.f32 %v1009_v35, %v2182_v17  ;;  %v1129_v7 = vmax.f32 %v1022_v55, 0.0 }
 0x32f   :  { %v1027_v45 = vpop.f32.mrf.mxu0  ;;  %v1116_v46 = vpop.f32.mrf.mxu1  ;;  %v1131_v18 = vmax.f32 %v1111_v57, 0.0 }
 0x330   :  { %v1028_v47 = vadd.f32 %v1027_v45, %v2174_v13  ;;  %v1117_v48 = vadd.f32 %v1116_v46, %v2174_v13  ;;  %v1130_v0 = vmax.f32 %v1024_v51, 0.0  ;;  %v1132_v5 = vmax.f32 %v1113_v52, 0.0 }
 0x331   :  { %v1029_v49 = vpop.f32.mrf.mxu0  ;;  %v1118_v50 = vpop.f32.mrf.mxu1  ;;  %v1121_v30 = vmax.f32 %v1010_v14, 0.0 }
 0x332   :  { %v1030_v53 = vadd.f32 %v1029_v49, %v2174_v13  ;;  %v1119_v54 = vadd.f32 %v1118_v50, %v2174_v13  ;;  %v1133_v4 = vmax.f32 %v1028_v47, 0.0  ;;  %v1135_v60 = vmax.f32 %v1117_v48, 0.0 }
 0x333   :  { %v1101_v13 = vadd.f32 %v1100_v39, %v2182_v17 }
 0x334   :  { %v1134_v2 = vmax.f32 %v1030_v53, 0.0  ;;  %v1136_v62 = vmax.f32 %v1119_v54, 0.0 }
 0x335   :  { %v1124_v29 = vmax.f32 %v1101_v13, 0.0 }
 0x336   :  { %1235 = vmatprep.subr.mxu0 %v1134_v2  ;;  %1324 = vmatprep.subr.mxu1 %v1136_v62 }
 0x337   :  { %1236 = vmatpush1.msra.mxu0 %v1133_v4  ;;  %1325 = vmatpush1.msra.mxu1 %v1135_v60 }
 0x338   :  { %1237 = vmatprep.subr.mxu0 %v1130_v0  ;;  %1326 = vmatprep.subr.mxu1 %v1132_v5 }
 0x339   :  { %1238 = vmatpush1.msra.mxu0 %v1129_v7  ;;  %1327 = vmatpush1.msra.mxu1 %v1131_v18 }
 0x33a   :  { %1239 = vmatprep.subr.mxu0 %v1126_v19  ;;  %1328 = vmatprep.subr.mxu1 %v1128_v15 }
 0x33b   :  { %1240 = vmatpush1.msra.mxu0 %v1125_v26  ;;  %1329 = vmatpush1.msra.mxu1 %v1127_v27 }
 0x33c   :  { %1241 = vmatprep.subr.mxu0 %v1122_v28  ;;  %1330 = vmatprep.subr.mxu1 %v1124_v29 }
 0x33d   :  { %1242 = vmatpush1.msra.mxu0 %v1121_v30  ;;  %1331 = vmatpush1.msra.mxu1 %v1123_v31 }
 0x33e   :  { %1751 = vmatmul.mubr.msk.f32.vlgmr.msra.gmra.mxu0 %vm128_vm0, %v2186_v21  ;;  %1755 = vmatmul.mubr.msk.f32.vlgmr.msra.gmra.mxu1 %vm128_vm0, %v2186_v21 }
 0x33f   :  { %1281 = vmatprep.mubr.f32.mxu0 %v1876_v1  ;;  %1370 = vmatprep.mubr.f32.mxu1 %v1876_v1 }
 0x342   :  { %1752 = vmatmul.mubr.msk.f32.gmra.mxu0 %vm128_vm0, %v2190_v23  ;;  %1756 = vmatmul.mubr.msk.f32.gmra.mxu1 %vm128_vm0, %v2190_v23 }
 0x343   :  { %1287 = vmatprep.mubr.f32.mxu0 %v1876_v1  ;;  %1376 = vmatprep.mubr.f32.mxu1 %v1876_v1 }
 0x346   :  { %1753 = vmatmul.mubr.msk.f32.gmra.mxu0 %vm128_vm0, %v2194_v25  ;;  %1757 = vmatmul.mubr.msk.f32.gmra.mxu1 %vm128_vm0, %v2194_v25 }
 0x347   :  { %1293 = vmatprep.mubr.f32.mxu0 %v1876_v1  ;;  %1382 = vmatprep.mubr.f32.mxu1 %v1876_v1 }
 0x34a   :  { %1754 = vmatmul.mubr.msk.f32.gmra.mxu0 %vm128_vm0, %v2198_v41  ;;  %1758 = vmatmul.mubr.msk.f32.gmra.mxu1 %vm128_vm0, %v2198_v41 }
 0x34b   :  { %1543 = vmatprep.mubr.f32.mxu0 %v1876_v1  ;;  %1632 = vmatprep.mubr.f32.mxu1 %v1876_v1 }
 0x3fe   :  { %v1277_v17 = vpop.f32.mrf.mxu0  ;;  %v1366_v21 = vpop.f32.mrf.mxu1 }
 0x3ff   :  { %v1367_v63 = vadd.f32 %v1366_v21, %v2192_v24 }
 0x400   :  { %v1279_v23 = vpop.f32.mrf.mxu0  ;;  %v1368_v32 = vpop.f32.mrf.mxu1 }
 0x401   :  { %v1280_v59 = vadd.f32 %v1279_v23, %v2192_v24  ;;  %v1391_v6 = vmax.f32 %v1367_v63, 0.0 }
 0x402   :  { %v1283_v37 = vpop.f32.mrf.mxu0  ;;  %v1372_v25 = vpop.f32.mrf.mxu1 }
 0x403   :  { %v1284_v54 = vadd.f32 %v1283_v37, %v2188_v22  ;;  %v1373_v55 = vadd.f32 %v1372_v25, %v2188_v22  ;;  %v1390_v0 = vmax.f32 %v1280_v59, 0.0 }
 0x404   :  { %v1285_v35 = vpop.f32.mrf.mxu0  ;;  %v1374_v36 = vpop.f32.mrf.mxu1 }
 0x405   :  { %v1286_v50 = vadd.f32 %v1285_v35, %v2188_v22  ;;  %v1375_v51 = vadd.f32 %v1374_v36, %v2188_v22  ;;  %v1393_v61 = vmax.f32 %v1284_v54, 0.0  ;;  %v1395_v13 = vmax.f32 %v1373_v55, 0.0 }
 0x406   :  { %v1289_v38 = vpop.f32.mrf.mxu0  ;;  %v1378_v39 = vpop.f32.mrf.mxu1 }
 0x407   :  { %v1290_v48 = vadd.f32 %v1289_v38, %v2184_v20  ;;  %v1379_v49 = vadd.f32 %v1378_v39, %v2184_v20  ;;  %v1394_v60 = vmax.f32 %v1286_v50, 0.0  ;;  %v1396_v22 = vmax.f32 %v1375_v51, 0.0 }
 0x408   :  { %v1291_v33 = vpop.f32.mrf.mxu0  ;;  %v1380_v34 = vpop.f32.mrf.mxu1 }
 0x409   :  { %v1292_v43 = vadd.f32 %v1291_v33, %v2184_v20  ;;  %v1381_v45 = vadd.f32 %v1380_v34, %v2184_v20  ;;  %v1278_v20 = vadd.f32 %v1277_v17, %v2192_v24  ;;  %v1397_v3 = vmax.f32 %v1290_v48, 0.0 }
 0x40a   :  { %v1295_v8 = vpop.f32.mrf.mxu0  ;;  %v1384_v9 = vpop.f32.mrf.mxu1  ;;  %v1399_v4 = vmax.f32 %v1379_v49, 0.0 }
 0x40b   :  { %v1296_v41 = vadd.f32 %v1295_v8, %v2180_v16  ;;  %v1385_v10 = vadd.f32 %v1384_v9, %v2180_v16  ;;  %v1398_v2 = vmax.f32 %v1292_v43, 0.0  ;;  %v1400_v62 = vmax.f32 %v1381_v45, 0.0 }
 0x40c   :  { %v1297_v11 = vpop.f32.mrf.mxu0  ;;  %v1386_v12 = vpop.f32.mrf.mxu1  ;;  %v1389_v14 = vmax.f32 %v1278_v20, 0.0 }
 0x40d   :  { %v1298_v46 = vadd.f32 %v1297_v11, %v2180_v16  ;;  %v1387_v47 = vadd.f32 %v1386_v12, %v2180_v16  ;;  %v1401_v57 = vmax.f32 %v1296_v41, 0.0  ;;  %v1403_v58 = vmax.f32 %v1385_v10, 0.0 }
 0x40e   :  { %v1369_v16 = vadd.f32 %v1368_v32, %v2192_v24 }
 0x40f   :  { %v1402_v52 = vmax.f32 %v1298_v46, 0.0  ;;  %v1404_v53 = vmax.f32 %v1387_v47, 0.0 }
 0x410   :  { %v1392_v5 = vmax.f32 %v1369_v16, 0.0 }
 0x411   :  { %1503 = vmatprep.subr.mxu0 %v1402_v52  ;;  %1592 = vmatprep.subr.mxu1 %v1404_v53 }
 0x412   :  { %1504 = vmatpush1.msra.mxu0 %v1401_v57  ;;  %1593 = vmatpush1.msra.mxu1 %v1403_v58 }
 0x413   :  { %1505 = vmatprep.subr.mxu0 %v1398_v2  ;;  %1594 = vmatprep.subr.mxu1 %v1400_v62 }
 0x414   :  { %1506 = vmatpush1.msra.mxu0 %v1397_v3  ;;  %1595 = vmatpush1.msra.mxu1 %v1399_v4 }
 0x415   :  { %1507 = vmatprep.subr.mxu0 %v1394_v60  ;;  %1596 = vmatprep.subr.mxu1 %v1396_v22 }
 0x416   :  { %1508 = vmatpush1.msra.mxu0 %v1393_v61  ;;  %1597 = vmatpush1.msra.mxu1 %v1395_v13 }
 0x417   :  { %1509 = vmatprep.subr.mxu0 %v1390_v0  ;;  %1598 = vmatprep.subr.mxu1 %v1392_v5 }
 0x418   :  { %1510 = vmatpush1.msra.mxu0 %v1389_v14  ;;  %1599 = vmatpush1.msra.mxu1 %v1391_v6 }
 0x419   :  { %1763 = vmatmul.mubr.msk.f32.vlgmr.msra.gmra.mxu0 %vm128_vm0, %v2196_v40  ;;  %1767 = vmatmul.mubr.msk.f32.vlgmr.msra.gmra.mxu1 %vm128_vm0, %v2196_v40 }
 0x41a   :  { %1549 = vmatprep.mubr.f32.mxu0 %v1876_v1  ;;  %1638 = vmatprep.mubr.f32.mxu1 %v1876_v1 }
 0x41d   :  { %1764 = vmatmul.mubr.msk.f32.gmra.mxu0 %vm128_vm0, %v2200_v42  ;;  %1768 = vmatmul.mubr.msk.f32.gmra.mxu1 %vm128_vm0, %v2200_v42 }
 0x41e   :  { %1555 = vmatprep.mubr.f32.mxu0 %v1876_v1  ;;  %1644 = vmatprep.mubr.f32.mxu1 %v1876_v1 }
 0x421   :  { %1765 = vmatmul.mubr.msk.f32.gmra.mxu0 %vm128_vm0, %v2202_v44  ;;  %1769 = vmatmul.mubr.msk.f32.gmra.mxu1 %vm128_vm0, %v2202_v44 }
 0x422   :  { %1561 = vmatprep.mubr.f32.mxu0 %v1876_v1  ;;  %1650 = vmatprep.mubr.f32.mxu1 %v1876_v1 }
 0x425   :  { %1766 = vmatmul.mubr.msk.f32.gmra.mxu0 %vm128_vm0, %v2204_v56  ;;  %1770 = vmatmul.mubr.msk.f32.gmra.mxu1 %vm128_vm0, %v2204_v56 }
 0x426   :  { %1834 = shalt.err (!%p1831_p0)
}
 0x427   :  { %s1878_s9 = smov 512   ;;  %s1879_s3 = smov 32   ;;  %v1418_v1 = vpop.permute.xlu0 %1417 }
 0x428   :  { %1684 = dma.vmem_to_hbm [thread:$0]  %s1679_s4, 2048, %s2301_s5, [#allocation4], %s1878_s9, %s1878_s9, %s1879_s3  }
 0x429   :  { %s1880_s5 = smov [#allocation8]  }
 0x42a   :  { %s1690_s12 = sshll.u32 %s1880_s5, 4  ;;  %s1691_s12 = int_to_ptr.vmem [resolvable:$true] %s1690_s12 }
 0x42b   :  { %v1423_v24 = vpop.permute.xlu0 %1422  ;;  %s1843_s13 = scalar_lea.vmem %s1691_s12, 2048  ;;  %p1848_p2 = scmp.lt.s32.totalorder %s1691_s12, %s1691_s12 }
 0x42c   :  { %p1844_p1 = scmp.ne.s32.totalorder %s1691_s12, %s1843_s13  ;;  %p1849_p3 = scmp.lt.s32.totalorder %s1843_s13, %s1843_s13 }
 0x42e   :  { %p1850_p4 = por %p1849_p3, %p1848_p2 }
 0x42f   :  { %v1428_v28 = vpop.permute.xlu0 %1427 }
 0x430   :  { %p1851_p5 = pnand %p1850_p4, %p1844_p1 }
 0x433   :  { %v1433_v39 = vpop.permute.xlu0 %1432 }
 0x4d9   :  { %v1545_v40 = vpop.f32.mrf.mxu0  ;;  %v1634_v42 = vpop.f32.mrf.mxu1 }
 0x4da   :  { %v1546_v44 = vadd.f32 %v1545_v40, %v1418_v1  ;;  %v1635_v56 = vadd.f32 %v1634_v42, %v1418_v1 }
 0x4db   :  { %v1547_v7 = vpop.f32.mrf.mxu0  ;;  %v1636_v18 = vpop.f32.mrf.mxu1 }
 0x4dc   :  { %1657 = vst [vmem:[#allocation8] sm:$0xff] %v1546_v44  ;;  %1659 = vst [vmem:[#allocation8 + $0x10] sm:$0xff] %v1635_v56  ;;  %v1548_v19 = vadd.f32 %v1547_v7, %v1418_v1  ;;  %v1637_v15 = vadd.f32 %v1636_v18, %v1418_v1 }
 0x4dd   :  { %v1551_v26 = vpop.f32.mrf.mxu0  ;;  %v1640_v27 = vpop.f32.mrf.mxu1 }
 0x4de   :  { %1658 = vst [vmem:[#allocation8 + $0x8] sm:$0xff] %v1548_v19  ;;  %1660 = vst [vmem:[#allocation8 + $0x18] sm:$0xff] %v1637_v15  ;;  %v1552_v29 = vadd.f32 %v1551_v26, %v1423_v24  ;;  %v1641_v30 = vadd.f32 %v1640_v27, %v1423_v24 }
 0x4df   :  { %v1553_v31 = vpop.f32.mrf.mxu0  ;;  %v1642_v17 = vpop.f32.mrf.mxu1 }
 0x4e0   :  { %1661 = vst [vmem:[#allocation8 + $0x20] sm:$0xff] %v1552_v29  ;;  %1663 = vst [vmem:[#allocation8 + $0x30] sm:$0xff] %v1641_v30  ;;  %v1554_v21 = vadd.f32 %v1553_v31, %v1423_v24  ;;  %v1643_v23 = vadd.f32 %v1642_v17, %v1423_v24 }
 0x4e1   :  { %v1557_v32 = vpop.f32.mrf.mxu0  ;;  %v1646_v37 = vpop.f32.mrf.mxu1 }
 0x4e2   :  { %1662 = vst [vmem:[#allocation8 + $0x28] sm:$0xff] %v1554_v21  ;;  %1664 = vst [vmem:[#allocation8 + $0x38] sm:$0xff] %v1643_v23  ;;  %v1558_v25 = vadd.f32 %v1557_v32, %v1428_v28  ;;  %v1647_v35 = vadd.f32 %v1646_v37, %v1428_v28 }
 0x4e3   :  { %v1559_v36 = vpop.f32.mrf.mxu0  ;;  %v1648_v38 = vpop.f32.mrf.mxu1 }
 0x4e4   :  { %1665 = vst [vmem:[#allocation8 + $0x40] sm:$0xff] %v1558_v25  ;;  %1667 = vst [vmem:[#allocation8 + $0x50] sm:$0xff] %v1647_v35  ;;  %v1560_v33 = vadd.f32 %v1559_v36, %v1428_v28  ;;  %v1649_v34 = vadd.f32 %v1648_v38, %v1428_v28 }
 0x4e5   :  { %v1563_v8 = vpop.f32.mrf.mxu0  ;;  %v1652_v9 = vpop.f32.mrf.mxu1 }
 0x4e6   :  { %1666 = vst [vmem:[#allocation8 + $0x48] sm:$0xff] %v1560_v33  ;;  %1668 = vst [vmem:[#allocation8 + $0x58] sm:$0xff] %v1649_v34  ;;  %v1564_v41 = vadd.f32 %v1563_v8, %v1433_v39  ;;  %v1653_v10 = vadd.f32 %v1652_v9, %v1433_v39 }
 0x4e7   :  { %v1565_v11 = vpop.f32.mrf.mxu0  ;;  %v1654_v12 = vpop.f32.mrf.mxu1 }
 0x4e8   :  { %1669 = vst [vmem:[#allocation8 + $0x60] sm:$0xff] %v1564_v41  ;;  %1671 = vst [vmem:[#allocation8 + $0x70] sm:$0xff] %v1653_v10  ;;  %v1566_v43 = vadd.f32 %v1565_v11, %v1433_v39  ;;  %v1655_v45 = vadd.f32 %v1654_v12, %v1433_v39 }
 0x4ea   :  { %1670 = vst [vmem:[#allocation8 + $0x68] sm:$0xff] %v1566_v43  ;;  %1672 = vst [vmem:[#allocation8 + $0x78] sm:$0xff] %v1655_v45 }
 0x4eb   :  { %1854 = shalt.err (!%p1851_p5)
}
 0x4ec   :  { %1696 = dma.vmem_to_hbm [thread:$0]  %s1691_s12, 2048, %s2302_s6, [#allocation9], %s1878_s9, %s1878_s9, %s1879_s3  }
 0x4ed   :  { %1867 = dma.done.wait [#allocation4], 2048  }
 0x4ee   :  { %1868 = vsyncadd [#allocation4], 4294965248 }
 0x4ef   :  { %1869 = dma.done.wait [#allocation9], 2048  }
 0x4f0   :  { %1870 = vsyncadd [#allocation9], 4294965248 }
 0x4f1   :  { %1703 = vsyncpa [#allocation3], 1 }
 0x4f2   :  { %1704 = vsyncpa [#allocation6], 1 }
 0x4f3   :  { %1705 = vsyncpa [#allocation4], 1 }
 0x4f4   :  { %1706 = vsyncpa [#allocation9], 1 }

</bundles_post_ra>
